<compile_context>
chip_gen: v7x
topology: tpu7x:2x2x1
jax: 0.10.0
libtpu: 0.0.40
codegen_flags: <defaults>
</compile_context>

<pallas_src>
import math

import jax
import jax.numpy as jnp
from jax.experimental import pallas as pl
from jax.experimental.pallas import tpu as pltpu

_C = math.sqrt(2.0 / math.pi)          # sqrt(2/pi)
_C2 = 0.044715 * _C                    # folded: c*(x + 0.044715*x^3) = x*(c + c2*x*x)


def _gelu_kernel(x_ref, o_ref):
    x = x_ref[...].astype(jnp.float32)
    inner = x * (_C + _C2 * x * x)     # VPU filler under DMA
    o_ref[...] = (0.5 * x * (1.0 + jnp.tanh(inner))).astype(o_ref.dtype)  # tanh -> EUP


def _min_sublane(itemsize):
    # Packed sublane count per vreg row for the dtype width.
    return {1: 32, 2: 16, 4: 8}.get(itemsize, 8)


def _round_up(v, m):
    return ((v + m - 1) // m) * m


def _vmem_cap_bytes():
    try:
        return int(pltpu.get_tpu_info().vmem_capacity_bytes)
    except Exception:
        return 64 << 20        # conservative floor (v7x per-TC VMEM)


def _working_set_bytes(tr, tc, itemsize):
    blk = tr * tc * itemsize
    blk_f32 = tr * tc * 4
    # 2x double-buffered input + 2x output in native dtype, ~2 f32 temporaries
    # for the in-kernel upcast, plus fixed headroom for compiler scratch.
    return 4 * blk + 2 * blk_f32 + (2 << 20)


def gelu_pallas(x, *, target_block_bytes=4 << 20):
    """Tanh-approximation GELU, elementwise, any shape / dtype."""
    orig_shape = x.shape
    dtype = x.dtype
    n = x.size
    if n == 0:
        return x

    itemsize = jnp.dtype(dtype).itemsize
    min_sub = _min_sublane(itemsize)

    # ---- choose a lane-dense 2D slab (zero-copy whenever possible) ---------
    pad = 0
    if x.ndim >= 2 and x.shape[-1] >= 128 and x.shape[-1] % 128 == 0:
        # Native last dim is lane friendly: pure reshape, no copy.
        cols = x.shape[-1]
        rows = n // cols
        x2 = x.reshape(rows, cols)
    elif n % 128 == 0:
        # Flat length is 128-aligned: pick a 128-multiple divisor of n as the
        # lane width -> still a pure reshape, no pad, no extra HBM pass.
        m = n // 128
        k = 1
        for cand in range(min(m, 64), 0, -1):   # cap lane width at 8192
            if m % cand == 0:
                k = cand
                break
        cols = 128 * k
        rows = n // cols
        x2 = x.reshape(rows, cols)
    else:
        # Truly ragged: jnp.pad and the trailing [:n] slice each cost an extra
        # full HBM pass (unavoidable without a masked kernel).
        cols = min(8192, 128 * pl.cdiv(n, 128))
        rows = pl.cdiv(n, cols)
        pad = rows * cols - n
        flat = x.reshape(-1)
        if pad:
            flat = jnp.pad(flat, (0, pad))
        x2 = flat.reshape(rows, cols)

    # ---- tile sizes: full-width lane tiles, dtype-aware sublane rounding ---
    if cols * itemsize * min_sub <= target_block_bytes:
        tc = cols                                         # contiguous HBM rows
        tr = max(min_sub,
                 (target_block_bytes // (cols * itemsize) // min_sub) * min_sub)
    else:
        # One min-sublane stripe already exceeds the byte target: split lanes.
        tc = min(cols, max(128,
                 (target_block_bytes // (min_sub * itemsize) // 128) * 128))
        tr = min_sub
    if tr >= rows:
        tr = rows                                         # full extent is legal

    # Keep >=2 blocks on a "parallel" axis so both TensorCores get work on
    # multi-core chips (costs only one extra ~0.35us step on single-core).
    if tr == rows and pl.cdiv(cols, tc) == 1 and rows >= 2 * min_sub:
        tr = min(rows, _round_up(pl.cdiv(rows, 2), min_sub))

    # ---- fit the working set (incl. f32 upcast temporaries) under VMEM -----
    vmem_cap = _vmem_cap_bytes()
    budget = min(vmem_cap - (8 << 20), 48 << 20)
    while _working_set_bytes(tr, tc, itemsize) > budget:
        if tr >= 2 * min_sub:
            tr = max(min_sub, (tr // 2 // min_sub) * min_sub)
        elif tc >= 256:
            tc = max(128, (tc // 2 // 128) * 128)
        else:
            break

    grid = (pl.cdiv(rows, tr), pl.cdiv(cols, tc))
    vmem_limit = int(min(max(_working_set_bytes(tr, tc, itemsize), 16 << 20),
                         vmem_cap - (4 << 20)))

    cost = pl.CostEstimate(
        flops=10 * n,
        transcendentals=n,
        bytes_accessed=2 * n * itemsize,
    )

    out2 = pl.pallas_call(
        _gelu_kernel,
        out_shape=jax.ShapeDtypeStruct((rows, cols), dtype),
        grid_spec=pltpu.PrefetchScalarGridSpec(
            num_scalar_prefetch=0,
            grid=grid,
            in_specs=[pl.BlockSpec((tr, tc), lambda i, j: (i, j))],
            out_specs=pl.BlockSpec((tr, tc), lambda i, j: (i, j)),
        ),
        compiler_params=pltpu.CompilerParams(
            dimension_semantics=("parallel", "parallel"),
            vmem_limit_bytes=vmem_limit,
        ),
        cost_estimate=cost,
    )(x2)

    if pad:
        return out2.reshape(-1)[:n].reshape(orig_shape)
    return out2.reshape(orig_shape)


def gelu_reference(x):
    # Same tanh-approximation as the PyTorch module (not the exact erf GELU).
    return 0.5 * x * (1.0 + jnp.tanh(_C * (x + 0.044715 * jnp.power(x, 3))))


if __name__ == "__main__":
    key = jax.random.PRNGKey(0)
    k1, k2 = jax.random.split(key)

    # Case 1: GPT-style (batch, seq, hidden) with a non-128-aligned hidden dim
    # but a 128-divisible flat length -> exercises the zero-copy divisor path.
    x1 = jax.random.normal(k1, (2, 8, 32), dtype=jnp.float32)
    out1 = gelu_pallas(x1)
    jax.block_until_ready(out1)
    ref1 = gelu_reference(x1)
    assert out1.shape == x1.shape and out1.dtype == x1.dtype
    assert jnp.allclose(out1, ref1, atol=1e-5, rtol=1e-5), "f32 mismatch vs reference"

    # Case 2: 128-aligned last dim in bf16 -> native lane-dense path and
    # narrow-dtype I/O with in-kernel f32 upcast.
    x2 = jax.random.normal(k2, (4, 128), dtype=jnp.bfloat16)
    out2 = gelu_pallas(x2)
    jax.block_until_ready(out2)
    ref2 = gelu_reference(x2.astype(jnp.float32)).astype(jnp.bfloat16)
    assert out2.shape == x2.shape and out2.dtype == x2.dtype
    assert jnp.allclose(
        out2.astype(jnp.float32), ref2.astype(jnp.float32), atol=2e-2, rtol=2e-2
    ), "bf16 mismatch vs reference"

    print("KERNEL_OK")
</pallas_src>

<mosaic_0001>
module attributes {stable_mosaic.version = 11 : i64} {
  func.func @_gelu_kernel(%arg0: i32, %arg1: i32, %arg2: memref<1x512xf32, #tpu.memory_space<vmem>>, %arg3: memref<1x512xf32, #tpu.memory_space<vmem>>) attributes {dimension_semantics = [#tpu.dimension_semantics<parallel>, #tpu.dimension_semantics<parallel>], iteration_bounds = array<i64: 1, 1>, scalar_prefetch = 0 : i64, scratch_operands = 0 : i64, tpu.core_type = #tpu.core_type<tc>, window_params = [{transform_indices = @transform_0, window_bounds = array<i64: 1, 512>}, {transform_indices = @transform_1, window_bounds = array<i64: 1, 512>}]} {
    %c0 = arith.constant 0 : index
    %c0_0 = arith.constant 0 : index
    %0 = vector.load %arg2[%c0, %c0_0] : memref<1x512xf32, #tpu.memory_space<vmem>>, vector<1x512xf32>
    %cst = arith.constant 0.0356774069 : f32
    %1 = vector.broadcast %cst : f32 to vector<1x512xf32>
    %2 = arith.mulf %1, %0 : vector<1x512xf32>
    %3 = arith.mulf %2, %0 : vector<1x512xf32>
    %cst_1 = arith.constant 0.797884583 : f32
    %4 = vector.broadcast %cst_1 : f32 to vector<1x512xf32>
    %5 = arith.addf %4, %3 : vector<1x512xf32>
    %6 = arith.mulf %0, %5 : vector<1x512xf32>
    %cst_2 = arith.constant 5.000000e-01 : f32
    %7 = vector.broadcast %cst_2 : f32 to vector<1x512xf32>
    %8 = arith.mulf %7, %0 : vector<1x512xf32>
    %9 = math.tanh %6 : vector<1x512xf32>
    %cst_3 = arith.constant 1.000000e+00 : f32
    %10 = vector.broadcast %cst_3 : f32 to vector<1x512xf32>
    %11 = arith.addf %10, %9 : vector<1x512xf32>
    %12 = arith.mulf %8, %11 : vector<1x512xf32>
    %c0_4 = arith.constant 0 : index
    %c0_5 = arith.constant 0 : index
    %13 = vector.load %arg3[%c0_4, %c0_5] : memref<1x512xf32, #tpu.memory_space<vmem>>, vector<1x512xf32>
    tpu.vector_store %arg3[%c0_4, %c0_5], %12 {strides = array<i32>} : memref<1x512xf32, #tpu.memory_space<vmem>>, vector<1x512xf32>,
    return
  }
  func.func @transform_0(%arg0: i32, %arg1: i32) -> (i32, i32) {
    %c0_i32 = arith.constant 0 : i32
    return %arg0, %arg1 : i32, i32
  }
  func.func @transform_1(%arg0: i32, %arg1: i32) -> (i32, i32) {
    %c0_i32 = arith.constant 0 : i32
    return %arg0, %arg1 : i32, i32
  }
}

</mosaic_0001>

<bundles_post_ra>
// kernel: tpu_custom_call.1
= control target key start
LH: loop header
LB: loop body
LE: loop exit
PB: predicated region body
PF: predicated region fallthrough
CT: control target
= control target key end

     0   :  { %6 = vsyncpa [#allocation3], 0  ;;  %s138_s0 = inlined_call_operand.hbm [shape: f32[1,512], index: 0, kind: input, shape index: {}]   ;;  %s139_s1 = inlined_call_operand.hbm [shape: f32[1,512], index: 1, kind: output, shape index: {}]  }
   0x1   :  { %7 = vsyncpa [#allocation4], 0  ;;  %s102_s6 = smov [#allocation2]   ;;  %s54_s10 = scalar_lea.hbm %s138_s0, 64 }
   0x2   :  { %s14_s7 = sshll.u32 %s102_s6, 4  ;;  %p55_p0 = scmp.ne.s32.totalorder %s138_s0, %s54_s10  ;;  %s15_s7 = int_to_ptr.vmem [resolvable:$true] %s14_s7 }
   0x3   :  { %p58_p1 = scmp.lt.u32.totalorder %s54_s10, %s138_s0 }
   0x5   :  { %p60_p2 = pnand %p58_p1, %p55_p0 }
   0x7   :  { %63 = shalt.err (!%p60_p2)
}
   0x8   :  { %s64_s15 = scalar_lea.vmem %s15_s7, 64  ;;  %p69_p4 = scmp.lt.s32.totalorder %s15_s7, %s15_s7 }
   0x9   :  { %p65_p3 = scmp.ne.s32.totalorder %s15_s7, %s64_s15  ;;  %p70_p5 = scmp.lt.s32.totalorder %s64_s15, %s64_s15 }
   0xb   :  { %p71_p6 = por %p70_p5, %p69_p4 }
   0xd   :  { %p72_p7 = pnand %p71_p6, %p65_p3 }
   0xf   :  { %75 = shalt.err (!%p72_p7)
}
  0x10   :  { %17 = dma.hbm_to_vmem [thread:$0]  %s138_s0, 64, %s15_s7, [#allocation3]  }
  0x11   :  { %98 = dma.done.wait [#allocation3], 64  }
  0x12   :  { %99 = vsyncadd [#allocation3], 4294967232  ;;  %v21_v0 = vld [vmem:[#allocation2] sm:$0xf]  ;;  %v30_v5 = vlaneseq  ;;  %s103_s18 = smov [#allocation5]  }
  0x13   :  { %v22_v1 = vmul.f32 0.035677407, %v21_v0  ;;  %v26_v6 = vmul.f32 0.5, %v21_v0  ;;  %s41_s19 = sshll.u32 %s103_s18, 4  ;;  %s42_s19 = int_to_ptr.vmem [resolvable:$true] %s41_s19 }
  0x14   :  { %vm32_vm0 = vcmp.lt.s32.totalorder %v30_v5, 512  ;;  %s76_s20 = scalar_lea.vmem %s42_s19, 64  ;;  %p81_p9 = scmp.lt.s32.totalorder %s42_s19, %s42_s19 }
  0x15   :  { %v23_v2 = vmul.f32 %v22_v1, %v21_v0  ;;  %p77_p8 = scmp.ne.s32.totalorder %s42_s19, %s76_s20  ;;  %p82_p10 = scmp.lt.s32.totalorder %s76_s20, %s76_s20 }
  0x17   :  { %v24_v3 = vadd.f32 0.7978846, %v23_v2  ;;  %p83_p11 = por %p82_p10, %p81_p9 }
  0x19   :  { %v25_v4 = vmul.f32 %v24_v3, %v21_v0  ;;  %p84_p12 = pnand %p83_p11, %p77_p8 }
  0x1b   :  { %52 = vtanh.f32 %v25_v4 }
  0x25   :  { %v53_v7 = vpop.eup %52 }
  0x26   :  { %v28_v8 = vadd.f32 1.0, %v53_v7 }
  0x28   :  { %v29_v9 = vmul.f32 %v28_v8, %v26_v6 }
  0x2a   :  { %34 = vst.msk [vmem:[#allocation5] sm:$0xf] %vm32_vm0, %v29_v9 }
  0x2b   :  { %87 = shalt.err (!%p84_p12)
}
  0x2c   :  { %s88_s22 = scalar_lea.hbm %s139_s1, 64 }
  0x2d   :  { %p89_p13 = scmp.ne.s32.totalorder %s139_s1, %s88_s22  ;;  %p92_p0 = scmp.lt.u32.totalorder %s88_s22, %s139_s1 }
  0x2f   :  { %p94_p1 = pnand %p92_p0, %p89_p13 }
  0x31   :  { %97 = shalt.err (!%p94_p1)
}
  0x32   :  { %44 = dma.vmem_to_hbm [thread:$0]  %s42_s19, 64, %s139_s1, [#allocation4]  }
  0x33   :  { %100 = dma.done.wait [#allocation4], 64  }
  0x34   :  { %101 = vsyncadd [#allocation4], 4294967232 }
  0x35   :  { %48 = vsyncpa [#allocation3], 1 }
  0x36   :  { %49 = vsyncpa [#allocation4], 1 }

</bundles_post_ra>
